<compile_context>
chip_gen: v7x
topology: tpu7x:2x2x1
jax: 0.10.0
libtpu: 0.0.40
codegen_flags: <defaults>
</compile_context>

<pallas_src>
import functools

import numpy as np
import jax
import jax.numpy as jnp
from jax.experimental import pallas as pl
from jax.experimental.pallas import tpu as pltpu

_INT32_MAX = jnp.iinfo(jnp.int32).max
_BLOCK_BYTES = 2 * 1024 * 1024      # ~2 MiB input block (x2 for double buffering)
_FLAT_LANES = 1024                  # lane width of the flattened-argmax slab


# ----------------------------- kernels --------------------------------------
def _argmax_last_kernel(x_ref, o_ref):
    """Argmax over the last (lane) axis of a (TM, K) block -> (TM, 1)."""
    x = x_ref[...]
    m = jnp.max(x, axis=1, keepdims=True)
    hit = x == m
    if jnp.issubdtype(x_ref.dtype, jnp.floating):
        hit = hit | jnp.isnan(x)                      # NaN treated as max (torch)
    k_iota = jax.lax.broadcasted_iota(jnp.int32, x.shape, 1)
    cand = jnp.where(hit, k_iota, _INT32_MAX)
    o_ref[...] = jnp.min(cand, axis=1, keepdims=True)


def _argmax_mid_kernel(x_ref, o_ref):
    """Argmax over axis 1 (sublane axis) of a (1, K, TS) block -> (1, 1, TS)."""
    x = x_ref[...]
    m = jnp.max(x, axis=1, keepdims=True)
    hit = x == m
    if jnp.issubdtype(x_ref.dtype, jnp.floating):
        hit = hit | jnp.isnan(x)
    k_iota = jax.lax.broadcasted_iota(jnp.int32, x.shape, 1)
    cand = jnp.where(hit, k_iota, _INT32_MAX)
    o_ref[...] = jnp.min(cand, axis=1, keepdims=True)   # lane-dense (1, 1, TS) store


def _argmax_flat_kernel(x_ref, o_ref, vacc, iacc, *, cols):
    """Global argmax of a flattened array tiled as (TM, cols) row blocks.

    Per block: per-column (max, first flat index).  Accumulated across the grid
    in VMEM scratch; the last grid step reduces across lanes to a (1, 1) scalar.
    """
    i = pl.program_id(0)
    is_float = jnp.issubdtype(x_ref.dtype, jnp.floating)
    tm = x_ref.shape[0]
    x = x_ref[...]                                            # (TM, cols)

    r_iota = jax.lax.broadcasted_iota(jnp.int32, x.shape, 0)
    c_iota = jax.lax.broadcasted_iota(jnp.int32, x.shape, 1)
    flat = (i * tm + r_iota) * cols + c_iota                  # row-major flat index

    m_col = jnp.max(x, axis=0, keepdims=True)                 # (1, cols)
    hit = x == m_col
    if is_float:
        hit = hit | jnp.isnan(x)
    idx_col = jnp.min(jnp.where(hit, flat, _INT32_MAX), axis=0, keepdims=True)

    @pl.when(i == 0)
    def _():
        vacc[...] = m_col
        iacc[...] = idx_col

    @pl.when(i > 0)
    def _():
        old_v = vacc[...]
        old_i = iacc[...]
        take = m_col > old_v                                  # strict > keeps earlier index
        if is_float:
            take = take | (jnp.isnan(m_col) & ~jnp.isnan(old_v))
        vacc[...] = jnp.where(take, m_col, old_v)
        iacc[...] = jnp.where(take, idx_col, old_i)

    @pl.when(i == pl.num_programs(0) - 1)
    def _():
        v = vacc[...]
        m = jnp.max(v, axis=1, keepdims=True)                 # (1, 1)
        hit2 = v == m
        if is_float:
            hit2 = hit2 | jnp.isnan(v)
        cand = jnp.where(hit2, iacc[...], _INT32_MAX)
        o_ref[...] = jnp.min(cand, axis=1, keepdims=True)


# ----------------------------- tile-size helpers -----------------------------
def _pick_row_tile(rows, k, itemsize, budget=_BLOCK_BYTES):
    tm = budget // max(1, k * itemsize)
    if tm >= rows:
        return rows                      # full dim: always a legal block
    tm = max(8, (tm // 8) * 8)           # sublane multiple
    return rows if tm >= rows else tm


def _pick_lane_tile(k, s, itemsize, budget=_BLOCK_BYTES):
    ts = budget // max(1, k * itemsize)
    if ts >= s or s <= 128:
        return s                         # full dim: always a legal block
    return max(128, (ts // 128) * 128)   # lane multiple


# ----------------------------- wrappers --------------------------------------
def _argmax_last(x):
    """argmax over the last axis."""
    shape = x.shape
    k = shape[-1]
    lead = shape[:-1]
    rows = int(np.prod(lead)) if lead else 1
    x2 = x.reshape(rows, k)
    itemsize = x.dtype.itemsize
    tm = _pick_row_tile(rows, k, itemsize)
    grid = (pl.cdiv(rows, tm),)
    out = pl.pallas_call(
        _argmax_last_kernel,
        grid=grid,
        in_specs=[pl.BlockSpec((tm, k), lambda i: (i, 0))],
        out_specs=pl.BlockSpec((tm, 1), lambda i: (i, 0)),
        out_shape=jax.ShapeDtypeStruct((rows, 1), jnp.int32),
        compiler_params=pltpu.CompilerParams(dimension_semantics=("parallel",)),
        cost_estimate=pl.CostEstimate(
            flops=3 * rows * k, transcendentals=0,
            bytes_accessed=rows * k * itemsize + rows * 4),
    )(x2)
    return out.reshape(lead)


def _argmax_mid(x, d):
    """argmax over axis d (not the last axis) without any wrapper transpose."""
    shape = x.shape
    p = int(np.prod(shape[:d])) if d > 0 else 1
    k = shape[d]
    s = int(np.prod(shape[d + 1:]))
    x3 = x.reshape(p, k, s)
    itemsize = x.dtype.itemsize
    ts = _pick_lane_tile(k, s, itemsize)
    grid = (p, pl.cdiv(s, ts))
    out = pl.pallas_call(
        _argmax_mid_kernel,
        grid=grid,
        in_specs=[pl.BlockSpec((1, k, ts), lambda pi, si: (pi, 0, si))],
        out_specs=pl.BlockSpec((1, 1, ts), lambda pi, si: (pi, 0, si)),
        out_shape=jax.ShapeDtypeStruct((p, 1, s), jnp.int32),
        compiler_params=pltpu.CompilerParams(
            dimension_semantics=("parallel", "parallel")),
        cost_estimate=pl.CostEstimate(
            flops=3 * p * k * s, transcendentals=0,
            bytes_accessed=p * k * s * itemsize + p * s * 4),
    )(x3)
    return out.reshape(shape[:d] + shape[d + 1:])


def _argmax_flat(x):
    """argmax over the flattened array (dim=None)."""
    n = int(np.prod(x.shape)) if x.ndim > 0 else 1
    xf = jnp.ravel(x)
    itemsize = x.dtype.itemsize
    cols = _FLAT_LANES
    rows = -(-n // cols)
    rows_budget = max(8, _BLOCK_BYTES // (cols * itemsize))
    if rows <= rows_budget:
        tm = rows
        rows_p = rows
    else:
        tm = max(8, (rows_budget // 8) * 8)
        rows_p = -(-rows // tm) * tm
    pad = rows_p * cols - n
    if pad:
        # Pad with the smallest representable value; padded flat indices are >= n
        # so they can never win ties against real elements.
        if jnp.issubdtype(x.dtype, jnp.floating):
            fill = jnp.array(-jnp.inf, dtype=x.dtype)
        else:
            fill = jnp.array(jnp.iinfo(x.dtype).min, dtype=x.dtype)
        xf = jnp.concatenate([xf, jnp.full((pad,), fill, dtype=x.dtype)])
    x2 = xf.reshape(rows_p, cols)
    nblocks = rows_p // tm
    out = pl.pallas_call(
        functools.partial(_argmax_flat_kernel, cols=cols),
        grid=(nblocks,),
        in_specs=[pl.BlockSpec((tm, cols), lambda i: (i, 0))],
        out_specs=pl.BlockSpec((1, 1), lambda i: (0, 0)),
        out_shape=jax.ShapeDtypeStruct((1, 1), jnp.int32),
        scratch_shapes=[pltpu.VMEM((1, cols), x.dtype),
                        pltpu.VMEM((1, cols), jnp.int32)],
        compiler_params=pltpu.CompilerParams(dimension_semantics=("arbitrary",)),
        cost_estimate=pl.CostEstimate(
            flops=4 * rows_p * cols, transcendentals=0,
            bytes_accessed=rows_p * cols * itemsize + 4),
    )(x2)
    return out.reshape(())


def argmax(x, dim=None):
    if x.dtype == jnp.bool_:
        x = x.astype(jnp.int32)
    if dim is None:
        return _argmax_flat(x)
    d = dim % x.ndim
    if d == x.ndim - 1:
        return _argmax_last(x)
    return _argmax_mid(x, d)


# ----------------------------- module ----------------------------------------
class ArgMax:
    """Pallas-TPU equivalent of farabio's `ArgMax(nn.Module)`."""

    def __init__(self, dim=None):
        self.dim = dim

    def __call__(self, x):
        return argmax(x, dim=self.dim)


# ----------------------------- demo / check -----------------------------------
if __name__ == "__main__":
    key = jax.random.PRNGKey(0)
    x = jax.random.normal(key, (2, 4, 16, 16), dtype=jnp.float32)  # NCHW

    out_flat = ArgMax()(x)            # dim=None (flattened)
    out_chan = ArgMax(dim=1)(x)       # channel argmax (segmentation use-case)
    out_last = ArgMax(dim=-1)(x)      # last-axis argmax
    jax.block_until_ready((out_flat, out_chan, out_last))

    # correctness vs plain JAX references
    np.testing.assert_array_equal(
        np.asarray(out_chan), np.asarray(jnp.argmax(x, axis=1)).astype(np.int32))
    np.testing.assert_array_equal(
        np.asarray(out_last), np.asarray(jnp.argmax(x, axis=-1)).astype(np.int32))
    assert out_flat.shape == ()
    assert int(out_flat) == int(jnp.argmax(x))

    # NaN handling matches torch.argmax (NaN treated as the maximum, first NaN wins)
    xn = x.at[0, 2, 3, 5].set(jnp.nan)
    assert int(ArgMax(dim=1)(xn)[0, 3, 5]) == 2

    # integer input path (ties break to the first index, same as torch/jnp)
    xi = jax.random.randint(jax.random.PRNGKey(1), (3, 7, 130), 0, 1000, dtype=jnp.int32)
    np.testing.assert_array_equal(
        np.asarray(ArgMax(dim=1)(xi)),
        np.asarray(jnp.argmax(xi, axis=1)).astype(np.int32))

    print("KERNEL_OK")
</pallas_src>

<mosaic_0001>
module attributes {stable_mosaic.version = 11 : i64} {
  func.func @_argmax_flat_kernel(%arg0: i32, %arg1: memref<2x1024xf32, #tpu.memory_space<vmem>>, %arg2: memref<1x1xi32, #tpu.memory_space<vmem>>, %arg3: memref<1x1024xf32, #tpu.memory_space<vmem>>, %arg4: memref<1x1024xi32, #tpu.memory_space<vmem>>) attributes {dimension_semantics = [#tpu.dimension_semantics<arbitrary>], iteration_bounds = array<i64: 1>, scalar_prefetch = 0 : i64, scratch_operands = 2 : i64, tpu.core_type = #tpu.core_type<tc>, window_params = [{transform_indices = @transform_0, window_bounds = array<i64: 2, 1024>}, {pipeline_mode = #tpu.pipeline_mode<synchronous>, transform_indices = @transform_1, window_bounds = array<i64: 1, 1>}]} {
    %c0 = arith.constant 0 : index
    %c0_0 = arith.constant 0 : index
    %0 = vector.load %arg1[%c0, %c0_0] : memref<2x1024xf32, #tpu.memory_space<vmem>>, vector<2x1024xf32>
    %1 = tpu.iota {dimensions = array<i32: 0>} : vector<2x1024xi32>
    %2 = tpu.iota {dimensions = array<i32: 1>} : vector<2x1024xi32>
    %c2_i32 = arith.constant 2 : i32
    %3 = arith.muli %arg0, %c2_i32 : i32
    %4 = vector.broadcast %3 : i32 to vector<2x1024xi32>
    %5 = arith.addi %4, %1 : vector<2x1024xi32>
    %c1024_i32 = arith.constant 1024 : i32
    %6 = vector.broadcast %c1024_i32 : i32 to vector<2x1024xi32>
    %7 = arith.muli %5, %6 : vector<2x1024xi32>
    %8 = arith.addi %7, %2 : vector<2x1024xi32>
    %cst = arith.constant dense<0xFF800000> : vector<1024xf32>
    %9 = vector.multi_reduction <maximumf>, %0, %cst [0] : vector<2x1024xf32> to vector<1024xf32>
    %10 = vector.shape_cast %9 : vector<1024xf32> to vector<1x1024xf32>
    %11 = vector.broadcast %10 : vector<1x1024xf32> to vector<2x1024xf32>
    %12 = arith.cmpf oeq, %0, %11 : vector<2x1024xf32>
    %13 = arith.cmpf one, %0, %0 : vector<2x1024xf32>
    %14 = arith.ori %12, %13 : vector<2x1024xi1>
    %c2147483647_i32 = arith.constant 2147483647 : i32
    %15 = vector.broadcast %c2147483647_i32 : i32 to vector<2x1024xi32>
    %16 = arith.select %14, %8, %15 : vector<2x1024xi1>, vector<2x1024xi32>
    %cst_1 = arith.constant dense<2147483647> : vector<1024xi32>
    %17 = vector.multi_reduction <minsi>, %16, %cst_1 [0] : vector<2x1024xi32> to vector<1024xi32>
    %18 = vector.shape_cast %17 : vector<1024xi32> to vector<1x1024xi32>
    %c0_i32 = arith.constant 0 : i32
    %19 = arith.cmpi eq, %arg0, %c0_i32 : i32
    %20 = arith.extui %19 : i1 to i32
    %c0_i32_2 = arith.constant 0 : i32
    %21 = arith.cmpi ne, %20, %c0_i32_2 : i32
    scf.if %21 {
      %c0_7 = arith.constant 0 : index
      %c0_8 = arith.constant 0 : index
      %28 = vector.load %arg3[%c0_7, %c0_8] : memref<1x1024xf32, #tpu.memory_space<vmem>>, vector<1x1024xf32>
      tpu.vector_store %arg3[%c0_7, %c0_8], %10 {strides = array<i32>} : memref<1x1024xf32, #tpu.memory_space<vmem>>, vector<1x1024xf32>,
      %c0_9 = arith.constant 0 : index
      %c0_10 = arith.constant 0 : index
      %29 = vector.load %arg4[%c0_9, %c0_10] : memref<1x1024xi32, #tpu.memory_space<vmem>>, vector<1x1024xi32>
      tpu.vector_store %arg4[%c0_9, %c0_10], %18 {strides = array<i32>} : memref<1x1024xi32, #tpu.memory_space<vmem>>, vector<1x1024xi32>,
    } else {
    }
    %c0_i32_3 = arith.constant 0 : i32
    %22 = arith.cmpi sgt, %arg0, %c0_i32_3 : i32
    %23 = arith.extui %22 : i1 to i32
    %c0_i32_4 = arith.constant 0 : i32
    %24 = arith.cmpi ne, %23, %c0_i32_4 : i32
    scf.if %24 {
      %c0_7 = arith.constant 0 : index
      %c0_8 = arith.constant 0 : index
      %28 = vector.load %arg3[%c0_7, %c0_8] : memref<1x1024xf32, #tpu.memory_space<vmem>>, vector<1x1024xf32>
      %c0_9 = arith.constant 0 : index
      %c0_10 = arith.constant 0 : index
      %29 = vector.load %arg4[%c0_9, %c0_10] : memref<1x1024xi32, #tpu.memory_space<vmem>>, vector<1x1024xi32>
      %30 = arith.cmpf ogt, %10, %28 : vector<1x1024xf32>
      %31 = arith.cmpf one, %10, %10 : vector<1x1024xf32>
      %32 = arith.cmpf one, %28, %28 : vector<1x1024xf32>
      %cst_11 = arith.constant dense<true> : vector<1x1024xi1>
      %33 = arith.xori %32, %cst_11 : vector<1x1024xi1>
      %34 = arith.andi %31, %33 : vector<1x1024xi1>
      %35 = arith.ori %30, %34 : vector<1x1024xi1>
      %36 = arith.select %35, %10, %28 : vector<1x1024xi1>, vector<1x1024xf32>
      %c0_12 = arith.constant 0 : index
      %c0_13 = arith.constant 0 : index
      %37 = vector.load %arg3[%c0_12, %c0_13] : memref<1x1024xf32, #tpu.memory_space<vmem>>, vector<1x1024xf32>
      tpu.vector_store %arg3[%c0_12, %c0_13], %36 {strides = array<i32>} : memref<1x1024xf32, #tpu.memory_space<vmem>>, vector<1x1024xf32>,
      %38 = arith.select %35, %18, %29 : vector<1x1024xi1>, vector<1x1024xi32>
      %c0_14 = arith.constant 0 : index
      %c0_15 = arith.constant 0 : index
      %39 = vector.load %arg4[%c0_14, %c0_15] : memref<1x1024xi32, #tpu.memory_space<vmem>>, vector<1x1024xi32>
      tpu.vector_store %arg4[%c0_14, %c0_15], %38 {strides = array<i32>} : memref<1x1024xi32, #tpu.memory_space<vmem>>, vector<1x1024xi32>,
    } else {
    }
    %c0_i32_5 = arith.constant 0 : i32
    %25 = arith.cmpi eq, %arg0, %c0_i32_5 : i32
    %26 = arith.extui %25 : i1 to i32
    %c0_i32_6 = arith.constant 0 : i32
    %27 = arith.cmpi ne, %26, %c0_i32_6 : i32
    scf.if %27 {
      %c0_7 = arith.constant 0 : index
      %c0_8 = arith.constant 0 : index
      %28 = vector.load %arg3[%c0_7, %c0_8] : memref<1x1024xf32, #tpu.memory_space<vmem>>, vector<1x1024xf32>
      %cst_9 = arith.constant dense<0xFF800000> : vector<1xf32>
      %29 = vector.multi_reduction <maximumf>, %28, %cst_9 [1] : vector<1x1024xf32> to vector<1xf32>
      %30 = vector.shape_cast %29 : vector<1xf32> to vector<1x1xf32>
      %31 = vector.broadcast %30 : vector<1x1xf32> to vector<1x1024xf32>
      %32 = arith.cmpf oeq, %28, %31 : vector<1x1024xf32>
      %33 = arith.cmpf one, %28, %28 : vector<1x1024xf32>
      %34 = arith.ori %32, %33 : vector<1x1024xi1>
      %c0_10 = arith.constant 0 : index
      %c0_11 = arith.constant 0 : index
      %35 = vector.load %arg4[%c0_10, %c0_11] : memref<1x1024xi32, #tpu.memory_space<vmem>>, vector<1x1024xi32>
      %c2147483647_i32_12 = arith.constant 2147483647 : i32
      %36 = vector.broadcast %c2147483647_i32_12 : i32 to vector<1x1024xi32>
      %37 = arith.select %34, %35, %36 : vector<1x1024xi1>, vector<1x1024xi32>
      %cst_13 = arith.constant dense<2147483647> : vector<1xi32>
      %38 = vector.multi_reduction <minsi>, %37, %cst_13 [1] : vector<1x1024xi32> to vector<1xi32>
      %39 = vector.shape_cast %38 : vector<1xi32> to vector<1x1xi32>
      %c0_14 = arith.constant 0 : index
      %c0_15 = arith.constant 0 : index
      %40 = vector.load %arg2[%c0_14, %c0_15] : memref<1x1xi32, #tpu.memory_space<vmem>>, vector<1x1xi32>
      tpu.vector_store %arg2[%c0_14, %c0_15], %39 {strides = array<i32>} : memref<1x1xi32, #tpu.memory_space<vmem>>, vector<1x1xi32>,
    } else {
    }
    return
  }
  func.func @transform_0(%arg0: i32) -> (i32, i32) {
    %c0_i32 = arith.constant 0 : i32
    %c0_i32_0 = arith.constant 0 : i32
    return %arg0, %c0_i32 : i32, i32
  }
  func.func @transform_1(%arg0: i32) -> (i32, i32) {
    %c0_i32 = arith.constant 0 : i32
    %c0_i32_0 = arith.constant 0 : i32
    %c0_i32_1 = arith.constant 0 : i32
    return %c0_i32, %c0_i32_0 : i32, i32
  }
}

</mosaic_0001>

<bundles_post_ra>
// kernel: tpu_custom_call.1
= control target key start
LH: loop header
LB: loop body
LE: loop exit
PB: predicated region body
PF: predicated region fallthrough
CT: control target
= control target key end

     0   :  { %6 = vsyncpa [#allocation5], 0  ;;  %s1154_s0 = inlined_call_operand.hbm [shape: f32[2,1024], index: 0, kind: input, shape index: {}]   ;;  %s1155_s1 = inlined_call_operand.hbm [shape: s32[1,1], index: 1, kind: output, shape index: {}]  }
   0x1   :  { %7 = vsyncpa [#allocation6], 0  ;;  %s940_s6 = smov [#allocation4]   ;;  %s892_s10 = scalar_lea.hbm %s1154_s0, 256 }
   0x2   :  { %s14_s7 = sshll.u32 %s940_s6, 4  ;;  %p893_p0 = scmp.ne.s32.totalorder %s1154_s0, %s892_s10  ;;  %s15_s7 = int_to_ptr.vmem [resolvable:$true] %s14_s7 }
   0x3   :  { %p896_p1 = scmp.lt.u32.totalorder %s892_s10, %s1154_s0 }
   0x5   :  { %p898_p2 = pnand %p896_p1, %p893_p0 }
   0x7   :  { %901 = shalt.err (!%p898_p2)
}
   0x8   :  { %s902_s15 = scalar_lea.vmem %s15_s7, 256  ;;  %p907_p4 = scmp.lt.s32.totalorder %s15_s7, %s15_s7 }
   0x9   :  { %p903_p3 = scmp.ne.s32.totalorder %s15_s7, %s902_s15  ;;  %p908_p5 = scmp.lt.s32.totalorder %s902_s15, %s902_s15 }
   0xb   :  { %p909_p6 = por %p908_p5, %p907_p4 }
   0xd   :  { %p910_p7 = pnand %p909_p6, %p903_p3 }
   0xf   :  { %913 = shalt.err (!%p910_p7)
}
  0x10   :  { %17 = dma.hbm_to_vmem [thread:$0]  %s1154_s0, 256, %s15_s7, [#allocation5]  }
  0x11   :  { %936 = dma.done.wait [#allocation5], 256  }
  0x12   :  { %937 = vsyncadd [#allocation5], 4294967040  ;;  %v23_v0 = vlaneseq  ;;  %v941_v1 = vmov 1983009808   ;;  %v942_v4 = vmov 1966171168  }
  0x13   :  { %v50_v2 = vunpack.c.l.s4 %v941_v1  ;;  %v352_v5 = vunpack.c.l.s4 %v942_v4  ;;  %vm90_vm0 = vcmask 1041408   ;;  %v974_v11 = vld [vmem:[#allocation4] sm:$0xff]  ;;  %v976_v12 = vld [vmem:[#allocation4 + $0x8] sm:$0xff]  ;;  %vm772_vm7 = vcmask 1040384   ;;  %s943_s0 = smov [#allocation7]  }
  0x14   :  { %v966_v3 = vshrl.u32 %v23_v0, 7  ;;  %v26_v7 = vand.u32 127, %v23_v0  ;;  %v48_v17 = vcombine.high %v974_v11, %v974_v11  ;;  %v65_v19 = vcombine.high %v976_v12, %v976_v12  ;;  %s877_s18 = sshll.u32 %s943_s0, 4  ;;  %s878_s18 = int_to_ptr.vmem [resolvable:$true] %s877_s18 }
  0x15   :  { %v51_v6 = vunpack.c.0.s8 %v50_v2  ;;  %v353_v8 = vunpack.c.0.s8 %v352_v5  ;;  %vm194_vm1 = vcmp.ne.f32.partialorder %v976_v12, %v976_v12  ;;  %vm193_vm2 = vcmp.ne.f32.partialorder %v974_v11, %v974_v11  ;;  %s914_s19 = scalar_lea.vmem %s878_s18, 16  ;;  %s918_s20 = scalar_lea.vmem %s878_s18, 32 }
  0x16   :  { %v27_v13 = vadd.s32 128, %v26_v7  ;;  %v978_v14 = vadd.s32 256, %v26_v7  ;;  %v980_v15 = vadd.s32 384, %v26_v7  ;;  %v982_v16 = vadd.s32 512, %v26_v7  ;;  %p915_p8 = scmp.ne.s32.totalorder %s878_s18, %s914_s19  ;;  %p919_p9 = scmp.lt.s32.totalorder %s878_s18, %s878_s18 }
  0x17   :  { %v969_v9 = vsub.s32 %v51_v6, %v966_v3  ;;  %v972_v10 = vsub.s32 %v353_v8, %v966_v3  ;;  %v992_v21 = vadd.s32 640, %v26_v7  ;;  %v994_v22 = vadd.s32 768, %v26_v7  ;;  %p920_p10 = scmp.lt.s32.totalorder %s918_s20, %s914_s19 }
  0x18   :  { %v996_v23 = vadd.s32 896, %v26_v7  ;;  %v999_v24 = vmul.u32 1024, %v966_v3 }
  0x19   :  { %v55_v18 = vrot.slane %v974_v11, %v969_v9  ;;  %v72_v20 = vrot.slane %v976_v12, %v969_v9  ;;  %v62_v25 = vrot.slane %v48_v17, %v969_v9  ;;  %v79_v27 = vrot.slane %v65_v19, %v969_v9  ;;  %p921_p11 = por %p920_p10, %p919_p9 }
  0x1a   :  { %v1006_v31 = vadd.s32 %v999_v24, %v26_v7  ;;  %v1009_v32 = vadd.s32 %v999_v24, %v27_v13 }
  0x1b   :  { %v63_v26 = vcombine.high %v55_v18, %v55_v18  ;;  %v80_v28 = vcombine.high %v72_v20, %v72_v20  ;;  %v91_v29 = vsel %vm90_vm0, %v55_v18, -inf  ;;  %v119_v30 = vsel %vm90_vm0, %v72_v20, -inf  ;;  %p922_p12 = pnand %p921_p11, %p915_p8 }
  0x1c   :  { %v64_v33 = vcombine.high %v62_v25, %v62_v25  ;;  %v81_v34 = vcombine.high %v79_v27, %v79_v27  ;;  %v92_v35 = vrot.slane %v91_v29, 4  ;;  %v105_v38 = vsel %vm90_vm0, %v62_v25, -inf }
  0x1d   :  { %v98_v36 = vsel %vm90_vm0, %v63_v26, -inf  ;;  %v120_v39 = vrot.slane %v119_v30, 4  ;;  %v126_v40 = vsel %vm90_vm0, %v80_v28, -inf  ;;  %v106_v42 = vrot.slane %v105_v38, 4 }
  0x1e   :  { %v99_v37 = vrot.slane %v98_v36, 4  ;;  %v93_v41 = vmax.f32 %v91_v29, %v92_v35  ;;  %v112_v43 = vsel %vm90_vm0, %v64_v33, -inf  ;;  %v127_v44 = vrot.slane %v126_v40, 4 }
  0x1f   :  { %v113_v46 = vrot.slane %v112_v43, 4  ;;  %v121_v47 = vmax.f32 %v119_v30, %v120_v39  ;;  %v133_v48 = vsel %vm90_vm0, %v79_v27, -inf  ;;  %v107_v50 = vmax.f32 %v105_v38, %v106_v42 }
  0x20   :  { %v100_v45 = vmax.f32 %v98_v36, %v99_v37  ;;  %v94_v49 = vrot.slane %v93_v41, 2  ;;  %v128_v51 = vmax.f32 %v126_v40, %v127_v44  ;;  %v134_v52 = vrot.slane %v133_v48, 4 }
  0x21   :  { %v114_v54 = vmax.f32 %v112_v43, %v113_v46  ;;  %v122_v55 = vrot.slane %v121_v47, 2  ;;  %v140_v56 = vsel %vm90_vm0, %v81_v34, -inf  ;;  %v108_v58 = vrot.slane %v107_v50, 2 }
  0x22   :  { %v101_v53 = vrot.slane %v100_v45, 2  ;;  %v95_v57 = vmax.f32 %v93_v41, %v94_v49  ;;  %v129_v59 = vrot.slane %v128_v51, 2  ;;  %v135_v60 = vmax.f32 %v133_v48, %v134_v52 }
  0x23   :  { %v115_v62 = vrot.slane %v114_v54, 2  ;;  %v123_v63 = vmax.f32 %v121_v47, %v122_v55  ;;  %v141_v0 = vrot.slane %v140_v56, 4  ;;  %v109_v2 = vmax.f32 %v107_v50, %v108_v58 }
  0x24   :  { %v102_v61 = vmax.f32 %v100_v45, %v101_v53  ;;  %v96_v1 = vrot.slane %v95_v57, 1  ;;  %v130_v4 = vmax.f32 %v128_v51, %v129_v59  ;;  %v136_v5 = vrot.slane %v135_v60, 2 }
  0x25   :  { %v116_v7 = vmax.f32 %v114_v54, %v115_v62  ;;  %v124_v8 = vrot.slane %v123_v63, 1  ;;  %v142_v13 = vmax.f32 %v140_v56, %v141_v0  ;;  %v110_v18 = vrot.slane %v109_v2, 1 }
  0x26   :  { %v103_v6 = vrot.slane %v102_v61, 1  ;;  %v97_v17 = vmax.f32 %v95_v57, %v96_v1  ;;  %v131_v19 = vrot.slane %v130_v4, 1  ;;  %v137_v20 = vmax.f32 %v135_v60, %v136_v5 }
  0x27   :  { %v117_v26 = vrot.slane %v116_v7, 1  ;;  %v125_v27 = vmax.f32 %v123_v63, %v124_v8  ;;  %v143_v28 = vrot.slane %v142_v13, 2  ;;  %v111_v29 = vmax.f32 %v109_v2, %v110_v18 }
  0x28   :  { %v104_v25 = vmax.f32 %v102_v61, %v103_v6  ;;  %v132_v30 = vmax.f32 %v130_v4, %v131_v19  ;;  %v138_v33 = vrot.slane %v137_v20, 1  ;;  %v40_v34 = vadd.s32 %v999_v24, %v978_v14 }
  0x29   :  { %v118_v35 = vmax.f32 %v116_v7, %v117_v26  ;;  %v144_v36 = vmax.f32 %v142_v13, %v143_v28  ;;  %v41_v38 = vadd.s32 %v999_v24, %v980_v15  ;;  %v42_v41 = vadd.s32 %v999_v24, %v982_v16 }
  0x2a   :  { %v155_v37 = vcombine.low %v97_v17, %v104_v25  ;;  %v139_v39 = vmax.f32 %v137_v20, %v138_v33  ;;  %v172_v40 = vcombine.low %v125_v27, %v132_v30  ;;  %v43_v42 = vadd.s32 %v999_v24, %v992_v21 }
  0x2b   :  { %v145_v43 = vrot.slane %v144_v36, 1  ;;  %v156_v44 = vcombine.low %v111_v29, %v118_v35  ;;  %v44_v14 = vadd.s32 %v999_v24, %v994_v22  ;;  %v45_v46 = vadd.s32 %v999_v24, %v996_v23 }
  0x2c   :  { %v357_v45 = vrot.slane %v155_v37, %v972_v10  ;;  %v163_v15 = vrot.slane %v155_v37, %v969_v9  ;;  %v180_v47 = vrot.slane %v172_v40, %v969_v9  ;;  %v197_v21 = vcombine.low %v1006_v31, %v1009_v32 }
  0x2d   :  { %v146_v48 = vmax.f32 %v144_v36, %v145_v43  ;;  %v364_v16 = vrot.slane %v156_v44, %v972_v10  ;;  %v198_v49 = vcombine.low %v40_v34, %v41_v38  ;;  %v214_v50 = vcombine.low %v42_v41, %v43_v42 }
  0x2e   :  { %v215_v51 = vcombine.low %v44_v14, %v45_v46  ;;  %v371_v53 = vrot.slane %v172_v40, %v972_v10  ;;  %v205_v54 = vrot.slane %v197_v21, %v969_v9  ;;  %v170_v31 = vrot.slane %v156_v44, %v969_v9 }
  0x2f   :  { %v173_v52 = vcombine.low %v139_v39, %v146_v48  ;;  %v379_v22 = vcombine.low %v357_v45, %v364_v16  ;;  %v212_v23 = vrot.slane %v198_v49, %v969_v9  ;;  %v222_v24 = vrot.slane %v214_v50, %v969_v9 }
  0x30   :  { %v229_v55 = vrot.slane %v215_v51, %v969_v9  ;;  %v171_v62 = vcombine.low %v163_v15, %v170_v31  ;;  %v1047_v63 = vsub.s32 0, %v966_v3  ;;  %v738_v0 = vsub.s32 1, %v966_v3 }
  0x31   :  { %v378_v56 = vrot.slane %v173_v52, %v972_v10  ;;  %v187_v57 = vrot.slane %v173_v52, %v969_v9  ;;  %v213_v32 = vcombine.low %v205_v54, %v212_v23  ;;  %v387_v60 = vrot.slane %v379_v22, %v972_v10 }
  0x32   :  { %v230_v58 = vcombine.low %v222_v24, %v229_v55  ;;  %v742_v1 = vsub.s32 2, %v966_v3  ;;  %v746_v4 = vsub.s32 3, %v966_v3  ;;  %vm191_vm4 = vcmp.eq.f32.partialorder %v974_v11, %v171_v62 }
  0x33   :  { %v380_v59 = vcombine.low %v371_v53, %v378_v56  ;;  %v188_v61 = vcombine.low %v180_v47, %v187_v57  ;;  %v750_v5 = vsub.s32 4, %v966_v3  ;;  %v754_v6 = vsub.s32 5, %v966_v3  ;;  %vm195_vm6 = vmor %vm191_vm4, %vm193_vm2 }
  0x34   :  { %v758_v7 = vsub.s32 6, %v966_v3  ;;  %v762_v8 = vsub.s32 7, %v966_v3  ;;  %v231_v19 = vsel %vm195_vm6, %v213_v32, 2147483647 }
  0x35   :  { %v394_v2 = vrot.slane %v380_v59, %v972_v10  ;;  %vm192_vm3 = vcmp.eq.f32.partialorder %v976_v12, %v188_v61  ;;  %v233_v16 = vcombine.high %v231_v19, %v231_v19  ;;  %v240_v51 = vrot.slane %v231_v19, %v969_v9 }
  0x36   :  { %vm196_vm5 = vmor %vm192_vm3, %vm194_vm1 }
  0x37   :  { %v1064_v13 = vcombine.low %v387_v60, %v394_v2  ;;  %v232_v17 = vsel %vm196_vm5, %v230_v58, 2147483647  ;;  %v247_v24 = vrot.slane %v233_v16, %v969_v9  ;;  %v248_v55 = vcombine.high %v240_v51, %v240_v51 }
  0x38   :  { %v250_v18 = vcombine.high %v232_v17, %v232_v17  ;;  %v257_v11 = vrot.slane %v232_v17, %v969_v9  ;;  %v267_v59 = vsel %vm90_vm0, %v240_v51, 2147483647 }
  0x39   :  { %v735_v20 = vrot.slane %v1064_v13, %v1047_v63  ;;  %v739_v25 = vrot.slane %v1064_v13, %v738_v0  ;;  %v743_v12 = vrot.slane %v1064_v13, %v742_v1  ;;  %v747_v26 = vrot.slane %v1064_v13, %v746_v4 }
  0x3a   :  { %v751_v27 = vrot.slane %v1064_v13, %v750_v5  ;;  %v755_v28 = vrot.slane %v1064_v13, %v754_v6  ;;  %v759_v29 = vrot.slane %v1064_v13, %v758_v7  ;;  %v763_v30 = vrot.slane %v1064_v13, %v762_v8 }
  0x3b   :  { %v773_v33 = vsel %vm772_vm7, %v735_v20, -inf  ;;  %v774_v34 = vsel %vm772_vm7, %v739_v25, -inf  ;;  %v775_v35 = vsel %vm772_vm7, %v743_v12, -inf  ;;  %v776_v36 = vsel %vm772_vm7, %v747_v26, -inf }
  0x3c   :  { %v777_v37 = vsel %vm772_vm7, %v751_v27, -inf  ;;  %v779_v38 = vsel %vm772_vm7, %v755_v28, -inf  ;;  %v781_v39 = vsel %vm772_vm7, %v759_v29, -inf  ;;  %v783_v40 = vsel %vm772_vm7, %v763_v30, -inf }
  0x3d   :  { %v778_v41 = vmax.f32 %v773_v33, %v777_v37  ;;  %v780_v42 = vmax.f32 %v774_v34, %v779_v38  ;;  %v782_v43 = vmax.f32 %v775_v35, %v781_v39  ;;  %v784_v44 = vmax.f32 %v776_v36, %v783_v40 }
  0x3e   :  { %v264_v45 = vrot.slane %v250_v18, %v969_v9  ;;  %v265_v14 = vcombine.high %v257_v11, %v257_v11  ;;  %v307_v46 = vsel %vm90_vm0, %v257_v11, 2147483647  ;;  %v249_v58 = vcombine.high %v247_v24, %v247_v24 }
  0x3f   :  { %v785_v15 = vmax.f32 %v778_v41, %v780_v42  ;;  %v786_v47 = vmax.f32 %v782_v43, %v784_v44  ;;  %v308_v48 = vrot.slane %v307_v46, 4  ;;  %v268_v17 = vrot.slane %v267_v59, 4 }
  0x40   :  { %v266_v21 = vcombine.high %v264_v45, %v264_v45  ;;  %v317_v49 = vsel %vm90_vm0, %v265_v14, 2147483647  ;;  %v327_v50 = vsel %vm90_vm0, %v264_v45, 2147483647  ;;  %v277_v9 = vsel %vm90_vm0, %v248_v55, 2147483647 }
  0x41   :  { %v787_v52 = vmax.f32 %v785_v15, %v786_v47  ;;  %vm309_vm8 = vcmp.lt.s32.totalorder %v307_v46, %v308_v48  ;;  %v318_v53 = vrot.slane %v317_v49, 4  ;;  %v328_v22 = vrot.slane %v327_v50, 4 }
  0x42   :  { %v310_v54 = vsel %vm309_vm8, %v307_v46, %v308_v48  ;;  %v337_v23 = vsel %vm90_vm0, %v266_v21, 2147483647  ;;  %vm269_vm15 = vcmp.lt.s32.totalorder %v267_v59, %v268_v17  ;;  %v278_v25 = vrot.slane %v277_v9, 4 }
  0x43   :  { %788 = vmax.xlane.f32.xlu0 %v787_v52  ;;  %v311_v56 = vrot.slane %v310_v54, 2  ;;  %vm319_vm9 = vcmp.lt.s32.totalorder %v317_v49, %v318_v53  ;;  %vm329_vm10 = vcmp.lt.s32.totalorder %v327_v50, %v328_v22  ;;  %v338_v57 = vrot.slane %v337_v23, 4 }
  0x44   :  { %v320_v31 = vsel %vm319_vm9, %v317_v49, %v318_v53  ;;  %v330_v32 = vsel %vm329_vm10, %v327_v50, %v328_v22  ;;  %v270_v29 = vsel %vm269_vm15, %v267_v59, %v268_v17  ;;  %vm279_vm3 = vcmp.lt.s32.totalorder %v277_v9, %v278_v25 }
  0x45   :  { %vm312_vm11 = vcmp.lt.s32.totalorder %v310_v54, %v311_v56  ;;  %v321_v60 = vrot.slane %v320_v31, 2  ;;  %v331_v61 = vrot.slane %v330_v32, 2  ;;  %vm339_vm12 = vcmp.lt.s32.totalorder %v337_v23, %v338_v57 }
  0x46   :  { %v313_v62 = vsel %vm312_vm11, %v310_v54, %v311_v56  ;;  %v340_v2 = vsel %vm339_vm12, %v337_v23, %v338_v57  ;;  %v271_v33 = vrot.slane %v270_v29, 2  ;;  %v280_v36 = vsel %vm279_vm3, %v277_v9, %v278_v25 }
  0x47   :  { %v314_v18 = vrot.slane %v313_v62, 1  ;;  %vm322_vm13 = vcmp.lt.s32.totalorder %v320_v31, %v321_v60  ;;  %vm332_vm14 = vcmp.lt.s32.totalorder %v330_v32, %v331_v61  ;;  %v341_v11 = vrot.slane %v340_v2, 2 }
  0x48   :  { %v323_v19 = vsel %vm322_vm13, %v320_v31, %v321_v60  ;;  %v333_v20 = vsel %vm332_vm14, %v330_v32, %v331_v61  ;;  %v287_v37 = vsel %vm90_vm0, %v247_v24, 2147483647  ;;  %vm272_vm8 = vcmp.lt.s32.totalorder %v270_v29, %v271_v33 }
  0x49   :  { %vm315_vm1 = vcmp.lt.s32.totalorder %v313_v62, %v314_v18  ;;  %v324_v12 = vrot.slane %v323_v19, 1  ;;  %v334_v26 = vrot.slane %v333_v20, 1  ;;  %vm342_vm2 = vcmp.lt.s32.totalorder %v340_v2, %v341_v11 }
  0x4a   :  { %v316_v27 = vsel %vm315_vm1, %v313_v62, %v314_v18  ;;  %v343_v28 = vsel %vm342_vm2, %v340_v2, %v341_v11  ;;  %v281_v39 = vrot.slane %v280_v36, 2  ;;  %v273_v41 = vsel %vm272_vm8, %v270_v29, %v271_v33 }
  0x4b   :  { %vm325_vm4 = vcmp.lt.s32.totalorder %v323_v19, %v324_v12  ;;  %vm335_vm5 = vcmp.lt.s32.totalorder %v333_v20, %v334_v26  ;;  %v344_v30 = vrot.slane %v343_v28, 1  ;;  %v288_v42 = vrot.slane %v287_v37, 4 }
  0x4c   :  { %v326_v34 = vsel %vm325_vm4, %v323_v19, %v324_v12  ;;  %v336_v35 = vsel %vm335_vm5, %v333_v20, %v334_v26  ;;  %v297_v43 = vsel %vm90_vm0, %v249_v58, 2147483647  ;;  %v274_v14 = vrot.slane %v273_v41, 1 }
  0x4d   :  { %vm345_vm6 = vcmp.lt.s32.totalorder %v343_v28, %v344_v30  ;;  %v400_v38 = vcombine.low %v316_v27, %v326_v34  ;;  %vm282_vm9 = vcmp.lt.s32.totalorder %v280_v36, %v281_v39  ;;  %vm289_vm10 = vcmp.lt.s32.totalorder %v287_v37, %v288_v42 }
  0x4e   :  { %v346_v40 = vsel %vm345_vm6, %v343_v28, %v344_v30  ;;  %v283_v46 = vsel %vm282_vm9, %v280_v36, %v281_v39  ;;  %v298_v15 = vrot.slane %v297_v43, 4  ;;  %vm275_vm11 = vcmp.lt.s32.totalorder %v273_v41, %v274_v14 }
  0x4f   :  { %v401_v44 = vcombine.low %v336_v35, %v346_v40  ;;  %v422_v45 = vrot.slane %v400_v38, %v972_v10  ;;  %v284_v48 = vrot.slane %v283_v46, 1  ;;  %v290_v16 = vsel %vm289_vm10, %v287_v37, %v288_v42 }
  0x50   :  { %v276_v21 = vsel %vm275_vm11, %v273_v41, %v274_v14  ;;  %v291_v49 = vrot.slane %v290_v16, 2  ;;  %vm299_vm12 = vcmp.lt.s32.totalorder %v297_v43, %v298_v15  ;;  %vm797_vm2 = vcmp.ne.f32.partialorder %v1064_v13, %v1064_v13 }
  0x51   :  { %v429_v47 = vrot.slane %v401_v44, %v972_v10  ;;  %vm285_vm13 = vcmp.lt.s32.totalorder %v283_v46, %v284_v48  ;;  %v300_v51 = vsel %vm299_vm12, %v297_v43, %v298_v15 }
  0x52   :  { %v286_v52 = vsel %vm285_vm13, %v283_v46, %v284_v48  ;;  %vm292_vm0 = vcmp.lt.s32.totalorder %v290_v16, %v291_v49  ;;  %v301_v53 = vrot.slane %v300_v51, 2 }
  0x53   :  { %v431_v50 = vcombine.low %v422_v45, %v429_v47  ;;  %v293_v54 = vsel %vm292_vm0, %v290_v16, %v291_v49  ;;  %v398_v23 = vcombine.low %v276_v21, %v286_v52 }
  0x54   :  { %v294_v24 = vrot.slane %v293_v54, 1  ;;  %vm302_vm14 = vcmp.lt.s32.totalorder %v300_v51, %v301_v53 }
  0x55   :  { %v445_v22 = vrot.slane %v431_v50, %v972_v10  ;;  %v303_v55 = vsel %vm302_vm14, %v300_v51, %v301_v53  ;;  %v408_v56 = vrot.slane %v398_v23, %v972_v10 }
  0x56   :  { %vm295_vm15 = vcmp.lt.s32.totalorder %v293_v54, %v294_v24  ;;  %v304_v57 = vrot.slane %v303_v55, 1 }
  0x57   :  { %v296_v31 = vsel %vm295_vm15, %v293_v54, %v294_v24 }
  0x58   :  { %vm305_vm1 = vcmp.lt.s32.totalorder %v303_v55, %v304_v57 }
  0x59   :  { %v306_v32 = vsel %vm305_vm1, %v303_v55, %v304_v57 }
  0x5a   :  { %v399_v58 = vcombine.low %v296_v31, %v306_v32 }
  0x5c   :  { %v415_v59 = vrot.slane %v399_v58, %v972_v10 }
  0x5e   :  { %v430_v60 = vcombine.low %v408_v56, %v415_v59 }
  0x60   :  { %v438_v61 = vrot.slane %v430_v60, %v972_v10 }
  0x62   :  { %v446_v62 = vcombine.low %v438_v61, %v445_v22 }
  0xd0   :  { %v789_v2 = vpop.xlane.xlu0 %788 }
  0xd1   :  { %v794_v17 = vrot.slane %v789_v2, %v1047_v63 }
  0xd3   :  { %vm796_vm3 = vcmp.eq.f32.partialorder %v1064_v13, %v794_v17 }
  0xd4   :  { %vm798_vm4 = vmor %vm796_vm3, %vm797_vm2 }
  0xd5   :  { %v800_v9 = vsel %vm798_vm4, %v446_v62, 2147483647 }
  0xd6   :  { %v804_v18 = vrot.slane %v800_v9, %v1047_v63  ;;  %v808_v11 = vrot.slane %v800_v9, %v738_v0  ;;  %v812_v19 = vrot.slane %v800_v9, %v742_v1  ;;  %v816_v10 = vrot.slane %v800_v9, %v746_v4 }
  0xd7   :  { %v820_v20 = vrot.slane %v800_v9, %v750_v5  ;;  %v824_v25 = vrot.slane %v800_v9, %v754_v6  ;;  %v828_v13 = vrot.slane %v800_v9, %v758_v7  ;;  %v832_v63 = vrot.slane %v800_v9, %v762_v8 }
  0xd8   :  { %v833_v0 = vsel %vm772_vm7, %v804_v18, 2147483647  ;;  %v834_v12 = vsel %vm772_vm7, %v808_v11, 2147483647  ;;  %v835_v1 = vsel %vm772_vm7, %v812_v19, 2147483647 }
  0xd9   :  { %v836_v4 = vsel %vm772_vm7, %v816_v10, 2147483647  ;;  %v837_v26 = vsel %vm772_vm7, %v820_v20, 2147483647  ;;  %v840_v5 = vsel %vm772_vm7, %v824_v25, 2147483647 }
  0xda   :  { %vm838_vm5 = vcmp.lt.s32.totalorder %v833_v0, %v837_v26  ;;  %vm841_vm6 = vcmp.lt.s32.totalorder %v834_v12, %v840_v5  ;;  %v843_v6 = vsel %vm772_vm7, %v828_v13, 2147483647  ;;  %v846_v7 = vsel %vm772_vm7, %v832_v63, 2147483647 }
  0xdb   :  { %v839_v3 = vsel %vm838_vm5, %v833_v0, %v837_v26  ;;  %v842_v8 = vsel %vm841_vm6, %v834_v12, %v840_v5  ;;  %vm844_vm8 = vcmp.lt.s32.totalorder %v835_v1, %v843_v6  ;;  %vm847_vm9 = vcmp.lt.s32.totalorder %v836_v4, %v846_v7 }
  0xdc   :  { %v845_v27 = vsel %vm844_vm8, %v835_v1, %v843_v6  ;;  %v848_v28 = vsel %vm847_vm9, %v836_v4, %v846_v7  ;;  %vm849_vm10 = vcmp.lt.s32.totalorder %v839_v3, %v842_v8  ;;  %vm869_vm7 = vcmask 0  }
  0xdd   :  { %v850_v29 = vsel %vm849_vm10, %v839_v3, %v842_v8  ;;  %vm851_vm11 = vcmp.lt.s32.totalorder %v845_v27, %v848_v28 }
  0xde   :  { %v852_v30 = vsel %vm851_vm11, %v845_v27, %v848_v28 }
  0xdf   :  { %vm853_vm12 = vcmp.lt.s32.totalorder %v850_v29, %v852_v30 }
  0xe0   :  { %v854_v33 = vsel %vm853_vm12, %v850_v29, %v852_v30 }
  0xe1   :  { %v856_v34 = vshra.s32 %v854_v33, 16  ;;  %v855_v36 = vand.u32 65535, %v854_v33 }
  0xe3   :  { %v858_v35 = vcvt.s32.f32 %v856_v34  ;;  %v857_v38 = vcvt.s32.f32 %v855_v36 }
  0xe5   :  { %859 = vmin.xlane.f32.xlu0 %v858_v35 }
 0x172   :  { %v860_v37 = vpop.xlane.xlu0 %859 }
 0x173   :  { %vm861_vm13 = vcmp.eq.f32.partialorder %v858_v35, %v860_v37  ;;  %v866_v40 = vcvt.f32.s32 %v860_v37 }
 0x174   :  { %v862_v39 = vsel %vm861_vm13, %v857_v38, inf }
 0x175   :  { %863 = vmin.xlane.f32.xlu1 %v862_v39  ;;  %v867_v42 = vshll.u32 %v866_v40, 16 }
 0x202   :  { %v864_v41 = vpop.xlane.xlu1 %863 }
 0x203   :  { %v865_v43 = vcvt.f32.s32 %v864_v41 }
 0x205   :  { %v868_v44 = vadd.s32 %v867_v42, %v865_v43 }
 0x207   :  { %870 = vst.msk [vmem:[#allocation7] sm:$0x1] %vm869_vm7, %v868_v44 }
 0x208   :  { %925 = shalt.err (!%p922_p12)
}
 0x209   :  { %s926_s23 = scalar_lea.hbm %s1155_s1, 16 }
 0x20a   :  { %p927_p13 = scmp.ne.s32.totalorder %s1155_s1, %s926_s23  ;;  %p930_p0 = scmp.lt.u32.totalorder %s926_s23, %s1155_s1 }
 0x20c   :  { %p932_p1 = pnand %p930_p0, %p927_p13 }
 0x20e   :  { %935 = shalt.err (!%p932_p1)
}
 0x20f   :  { %880 = dma.vmem_to_hbm [thread:$0]  %s878_s18, 16, %s1155_s1, [#allocation6]  }
 0x210   :  { %938 = dma.done.wait [#allocation6], 16  }
 0x211   :  { %939 = vsyncadd [#allocation6], 4294967280 }
 0x212   :  { %884 = vsyncpa [#allocation5], 1 }
 0x213   :  { %885 = vsyncpa [#allocation6], 1 }

</bundles_post_ra>
